<compile_context>
chip_gen: v7x
topology: tpu7x:2x2x1
jax: 0.10.0
libtpu: 0.0.40
codegen_flags: <defaults>
</compile_context>

<pallas_src>
import functools

import jax
import jax.numpy as jnp
from jax import lax
from jax.experimental import pallas as pl
from jax.experimental.pallas import tpu as pltpu


def _lstm_decoder_kernel(x_ref, wih_t_ref, whh_t_ref, b_ref, out_ref):
    """Single-call kernel: one input projection + fully-unrolled LSTM recurrence.

    Shapes (all f32, all VMEM-resident):
      x_ref     : (B, E)
      wih_t_ref : (E, 4H)      (W_ih transposed)
      whh_t_ref : (H, 4H)      (W_hh transposed, kept fused / lane-dense)
      b_ref     : (1, 4H)      (b_ih + b_hh fused)
      out_ref   : (B, T*H)     lane-dense; column block t*H:(t+1)*H is h_t
    """
    H = whh_t_ref.shape[0]
    T = out_ref.shape[1] // H

    x = x_ref[...]
    bias = b_ref[...]
    whh = whh_t_ref[...]  # (H, 4H): single lane-dense MXU RHS, no per-gate split

    # Input projection, done exactly once (the module feeds the SAME vector at
    # every timestep), shared by all T steps.
    x_proj = jnp.dot(x, wih_t_ref[...],
                     preferred_element_type=jnp.float32) + bias

    def gate_activations(gates):
        # Whole-vreg sigmoid via a single native EUP tanh:
        #   sigmoid(x) = 0.5 * (1 + tanh(0.5 * x))
        # applied to all 4H lanes at once; the g block (lanes 2H:3H) gets a
        # plain tanh instead (careful: i/f/o -> sigmoid, g -> tanh).
        s = 0.5 * (jnp.tanh(0.5 * gates) + 1.0)
        i_g = s[:, 0 * H:1 * H]
        f_g = s[:, 1 * H:2 * H]
        o_g = s[:, 3 * H:4 * H]
        g_g = jnp.tanh(gates[:, 2 * H:3 * H])
        return i_g, f_g, g_g, o_g

    hs = []

    # Peeled step 0: h0 = c0 = 0  =>  gates == x_proj, no recurrent matmul,
    # no f*c term, no zero-init stores.
    i_g, _, g_g, o_g = gate_activations(x_proj)
    c = i_g * g_g
    h = o_g * jnp.tanh(c)
    hs.append(h)

    # Steps 1 .. T-1, fully unrolled (T static, small).  h / c live in vregs;
    # ONE fused (B,H) @ (H,4H) MXU dot per step on the serial chain.
    for _ in range(1, T):
        gates = x_proj + jnp.dot(h, whh, preferred_element_type=jnp.float32)
        i_g, f_g, g_g, o_g = gate_activations(gates)
        c = f_g * c + i_g * g_g
        h = o_g * jnp.tanh(c)
        hs.append(h)
    # TODO(synk): if T grows beyond ~32, switch to lax.fori_loop with (h, c)
    # carries and unroll=4-8 to bound code size / vreg live ranges.

    # Lane-dense output stores: batch H-wide h_t blocks into 128-lane slabs so
    # we emit unmasked vst instead of T masked sub-128-lane stores.
    if H <= 128 and 128 % H == 0 and (T * H) % 128 == 0:
        group = 128 // H                      # T is a multiple of `group` here
        for g0 in range(0, T, group):
            out_ref[:, g0 * H:(g0 + group) * H] = jnp.concatenate(
                hs[g0:g0 + group], axis=1)
    else:
        for t in range(T):
            out_ref[:, t * H:(t + 1) * H] = hs[t]


def decoder_forward(x, w_ih, w_hh, b_ih, b_hh, *, seq_len):
    """JAX wrapper mirroring Decoder.forward.

    x     : (B, E) float32
    w_ih  : (4H, E)   w_hh : (4H, H)   b_ih, b_hh : (4H,)
    returns (B, T, H) float32
    """
    B, E = x.shape
    H = w_hh.shape[1]
    T = seq_len

    x = jnp.asarray(x, jnp.float32)
    wih_t = jnp.asarray(w_ih, jnp.float32).T                      # (E, 4H)
    whh_t = jnp.asarray(w_hh, jnp.float32).T                      # (H, 4H)
    bias = (jnp.asarray(b_ih, jnp.float32)
            + jnp.asarray(b_hh, jnp.float32)).reshape(1, 4 * H)   # (1, 4H)

    # Advisory cost hint so XLA schedules surrounding ops sensibly.
    flops = 2 * B * E * 4 * H + 2 * (T - 1) * B * H * 4 * H + 10 * T * B * H
    transcendentals = 6 * T * B * H
    bytes_accessed = 4 * (B * E + E * 4 * H + H * 4 * H + 4 * H + B * T * H)

    out_flat = pl.pallas_call(
        _lstm_decoder_kernel,
        out_shape=jax.ShapeDtypeStruct((B, T * H), jnp.float32),
        in_specs=[
            pl.BlockSpec(memory_space=pltpu.MemorySpace.VMEM),  # x
            pl.BlockSpec(memory_space=pltpu.MemorySpace.VMEM),  # W_ih^T
            pl.BlockSpec(memory_space=pltpu.MemorySpace.VMEM),  # W_hh^T
            pl.BlockSpec(memory_space=pltpu.MemorySpace.VMEM),  # bias
        ],
        out_specs=pl.BlockSpec(memory_space=pltpu.MemorySpace.VMEM),
        cost_estimate=pl.CostEstimate(
            flops=flops,
            transcendentals=transcendentals,
            bytes_accessed=bytes_accessed),
    )(x, wih_t, whh_t, bias)

    # (B, T*H) -> (B, T, H): free reshape, no transpose / extra HBM round trip.
    return out_flat.reshape(B, T, H)


def init_decoder_params(key, embedding_dim, n_features):
    """Deterministic LSTM parameter init (PyTorch-style U(-1/sqrt(H), 1/sqrt(H)))."""
    H, E = n_features, embedding_dim
    k = 1.0 / jnp.sqrt(jnp.asarray(H, jnp.float32))
    k1, k2, k3, k4 = jax.random.split(key, 4)
    w_ih = jax.random.uniform(k1, (4 * H, E), jnp.float32, -k, k)
    w_hh = jax.random.uniform(k2, (4 * H, H), jnp.float32, -k, k)
    b_ih = jax.random.uniform(k3, (4 * H,), jnp.float32, -k, k)
    b_hh = jax.random.uniform(k4, (4 * H,), jnp.float32, -k, k)
    return w_ih, w_hh, b_ih, b_hh


if __name__ == "__main__":
    # Small shapes consistent with Decoder(seq_len, embedding_dim, n_features)
    batch, seq_len, embedding_dim, n_features = 2, 8, 32, 32

    key = jax.random.PRNGKey(0)
    k_x, k_p = jax.random.split(key)
    x = jax.random.normal(k_x, (batch, embedding_dim), jnp.float32)
    w_ih, w_hh, b_ih, b_hh = init_decoder_params(k_p, embedding_dim, n_features)

    fwd = jax.jit(functools.partial(decoder_forward, seq_len=seq_len))
    out = fwd(x, w_ih, w_hh, b_ih, b_hh)
    out = jax.block_until_ready(out)

    assert out.shape == (batch, seq_len, n_features), out.shape
    assert out.dtype == jnp.float32

    # Pure-JAX reference (lax.scan LSTM) to sanity-check kernel semantics.
    def ref_forward(x, w_ih, w_hh, b_ih, b_hh):
        H = w_hh.shape[1]
        x_proj = jnp.dot(x, w_ih.T,
                         precision=lax.Precision.HIGHEST) + b_ih + b_hh

        def step(carry, _):
            h, c = carry
            gates = x_proj + jnp.dot(h, w_hh.T, precision=lax.Precision.HIGHEST)
            i = jax.nn.sigmoid(gates[:, 0 * H:1 * H])
            f = jax.nn.sigmoid(gates[:, 1 * H:2 * H])
            g = jnp.tanh(gates[:, 2 * H:3 * H])
            o = jax.nn.sigmoid(gates[:, 3 * H:4 * H])
            c = f * c + i * g
            h = o * jnp.tanh(c)
            return (h, c), h

        init = (jnp.zeros((x.shape[0], H), jnp.float32),
                jnp.zeros((x.shape[0], H), jnp.float32))
        _, hs = lax.scan(step, init, None, length=seq_len)
        return jnp.transpose(hs, (1, 0, 2))

    ref = ref_forward(x, w_ih, w_hh, b_ih, b_hh)
    assert jnp.allclose(out, ref, atol=1e-4, rtol=1e-4), (
        float(jnp.max(jnp.abs(out - ref))))

    print("KERNEL_OK")
</pallas_src>

<mosaic_0001>
module attributes {stable_mosaic.version = 11 : i64} {
  func.func @_lstm_decoder_kernel(%arg0: memref<2x32xf32, #tpu.memory_space<vmem>>, %arg1: memref<32x128xf32, #tpu.memory_space<vmem>>, %arg2: memref<32x128xf32, #tpu.memory_space<vmem>>, %arg3: memref<1x128xf32, #tpu.memory_space<vmem>>, %arg4: memref<2x256xf32, #tpu.memory_space<vmem>>) attributes {dimension_semantics = [], scalar_prefetch = 0 : i64, scratch_operands = 0 : i64, tpu.core_type = #tpu.core_type<tc>} {
    %c0 = arith.constant 0 : index
    %c0_0 = arith.constant 0 : index
    %0 = vector.load %arg0[%c0, %c0_0] : memref<2x32xf32, #tpu.memory_space<vmem>>, vector<2x32xf32>
    %c0_1 = arith.constant 0 : index
    %c0_2 = arith.constant 0 : index
    %1 = vector.load %arg3[%c0_1, %c0_2] : memref<1x128xf32, #tpu.memory_space<vmem>>, vector<1x128xf32>
    %c0_3 = arith.constant 0 : index
    %c0_4 = arith.constant 0 : index
    %2 = vector.load %arg2[%c0_3, %c0_4] : memref<32x128xf32, #tpu.memory_space<vmem>>, vector<32x128xf32>
    %c0_5 = arith.constant 0 : index
    %c0_6 = arith.constant 0 : index
    %3 = vector.load %arg1[%c0_5, %c0_6] : memref<32x128xf32, #tpu.memory_space<vmem>>, vector<32x128xf32>
    %cst = arith.constant dense<0.000000e+00> : vector<2x128xf32>
    %4 = tpu.matmul %0, %3, %cst {dimension_numbers = #tpu.dot_dimension_numbers<[1], [0], [0], [1], [0, 0, 1, 1], [], []>} : vector<2x32xf32>, vector<32x128xf32>, vector<2x128xf32> -> vector<2x128xf32>
    %5 = vector.broadcast %1 : vector<1x128xf32> to vector<2x128xf32>
    %6 = arith.addf %4, %5 : vector<2x128xf32>
    %cst_7 = arith.constant 5.000000e-01 : f32
    %7 = vector.broadcast %cst_7 : f32 to vector<2x128xf32>
    %8 = arith.mulf %7, %6 : vector<2x128xf32>
    %9 = math.tanh %8 : vector<2x128xf32>
    %cst_8 = arith.constant 1.000000e+00 : f32
    %10 = vector.broadcast %cst_8 : f32 to vector<2x128xf32>
    %11 = arith.addf %9, %10 : vector<2x128xf32>
    %cst_9 = arith.constant 5.000000e-01 : f32
    %12 = vector.broadcast %cst_9 : f32 to vector<2x128xf32>
    %13 = arith.mulf %12, %11 : vector<2x128xf32>
    %14 = vector.extract_strided_slice %13 {offsets = [0, 0], sizes = [2, 32], strides = [1, 1]} : vector<2x128xf32> to vector<2x32xf32>
    %15 = vector.extract_strided_slice %13 {offsets = [0, 96], sizes = [2, 32], strides = [1, 1]} : vector<2x128xf32> to vector<2x32xf32>
    %16 = vector.extract_strided_slice %6 {offsets = [0, 64], sizes = [2, 32], strides = [1, 1]} : vector<2x128xf32> to vector<2x32xf32>
    %17 = math.tanh %16 : vector<2x32xf32>
    %18 = arith.mulf %14, %17 : vector<2x32xf32>
    %19 = math.tanh %18 : vector<2x32xf32>
    %20 = arith.mulf %15, %19 : vector<2x32xf32>
    %cst_10 = arith.constant dense<0.000000e+00> : vector<2x128xf32>
    %21 = tpu.matmul %20, %2, %cst_10 {dimension_numbers = #tpu.dot_dimension_numbers<[1], [0], [0], [1], [0, 0, 1, 1], [], []>} : vector<2x32xf32>, vector<32x128xf32>, vector<2x128xf32> -> vector<2x128xf32>
    %22 = arith.addf %6, %21 : vector<2x128xf32>
    %cst_11 = arith.constant 5.000000e-01 : f32
    %23 = vector.broadcast %cst_11 : f32 to vector<2x128xf32>
    %24 = arith.mulf %23, %22 : vector<2x128xf32>
    %25 = math.tanh %24 : vector<2x128xf32>
    %cst_12 = arith.constant 1.000000e+00 : f32
    %26 = vector.broadcast %cst_12 : f32 to vector<2x128xf32>
    %27 = arith.addf %25, %26 : vector<2x128xf32>
    %cst_13 = arith.constant 5.000000e-01 : f32
    %28 = vector.broadcast %cst_13 : f32 to vector<2x128xf32>
    %29 = arith.mulf %28, %27 : vector<2x128xf32>
    %30 = vector.extract_strided_slice %29 {offsets = [0, 0], sizes = [2, 32], strides = [1, 1]} : vector<2x128xf32> to vector<2x32xf32>
    %31 = vector.extract_strided_slice %29 {offsets = [0, 32], sizes = [2, 32], strides = [1, 1]} : vector<2x128xf32> to vector<2x32xf32>
    %32 = vector.extract_strided_slice %29 {offsets = [0, 96], sizes = [2, 32], strides = [1, 1]} : vector<2x128xf32> to vector<2x32xf32>
    %33 = vector.extract_strided_slice %22 {offsets = [0, 64], sizes = [2, 32], strides = [1, 1]} : vector<2x128xf32> to vector<2x32xf32>
    %34 = math.tanh %33 : vector<2x32xf32>
    %35 = arith.mulf %31, %18 : vector<2x32xf32>
    %36 = arith.mulf %30, %34 : vector<2x32xf32>
    %37 = arith.addf %35, %36 : vector<2x32xf32>
    %38 = math.tanh %37 : vector<2x32xf32>
    %39 = arith.mulf %32, %38 : vector<2x32xf32>
    %cst_14 = arith.constant dense<0.000000e+00> : vector<2x128xf32>
    %40 = tpu.matmul %39, %2, %cst_14 {dimension_numbers = #tpu.dot_dimension_numbers<[1], [0], [0], [1], [0, 0, 1, 1], [], []>} : vector<2x32xf32>, vector<32x128xf32>, vector<2x128xf32> -> vector<2x128xf32>
    %41 = arith.addf %6, %40 : vector<2x128xf32>
    %cst_15 = arith.constant 5.000000e-01 : f32
    %42 = vector.broadcast %cst_15 : f32 to vector<2x128xf32>
    %43 = arith.mulf %42, %41 : vector<2x128xf32>
    %44 = math.tanh %43 : vector<2x128xf32>
    %cst_16 = arith.constant 1.000000e+00 : f32
    %45 = vector.broadcast %cst_16 : f32 to vector<2x128xf32>
    %46 = arith.addf %44, %45 : vector<2x128xf32>
    %cst_17 = arith.constant 5.000000e-01 : f32
    %47 = vector.broadcast %cst_17 : f32 to vector<2x128xf32>
    %48 = arith.mulf %47, %46 : vector<2x128xf32>
    %49 = vector.extract_strided_slice %48 {offsets = [0, 0], sizes = [2, 32], strides = [1, 1]} : vector<2x128xf32> to vector<2x32xf32>
    %50 = vector.extract_strided_slice %48 {offsets = [0, 32], sizes = [2, 32], strides = [1, 1]} : vector<2x128xf32> to vector<2x32xf32>
    %51 = vector.extract_strided_slice %48 {offsets = [0, 96], sizes = [2, 32], strides = [1, 1]} : vector<2x128xf32> to vector<2x32xf32>
    %52 = vector.extract_strided_slice %41 {offsets = [0, 64], sizes = [2, 32], strides = [1, 1]} : vector<2x128xf32> to vector<2x32xf32>
    %53 = math.tanh %52 : vector<2x32xf32>
    %54 = arith.mulf %50, %37 : vector<2x32xf32>
    %55 = arith.mulf %49, %53 : vector<2x32xf32>
    %56 = arith.addf %54, %55 : vector<2x32xf32>
    %57 = math.tanh %56 : vector<2x32xf32>
    %58 = arith.mulf %51, %57 : vector<2x32xf32>
    %cst_18 = arith.constant dense<0.000000e+00> : vector<2x128xf32>
    %59 = tpu.matmul %58, %2, %cst_18 {dimension_numbers = #tpu.dot_dimension_numbers<[1], [0], [0], [1], [0, 0, 1, 1], [], []>} : vector<2x32xf32>, vector<32x128xf32>, vector<2x128xf32> -> vector<2x128xf32>
    %60 = arith.addf %6, %59 : vector<2x128xf32>
    %cst_19 = arith.constant 5.000000e-01 : f32
    %61 = vector.broadcast %cst_19 : f32 to vector<2x128xf32>
    %62 = arith.mulf %61, %60 : vector<2x128xf32>
    %63 = math.tanh %62 : vector<2x128xf32>
    %cst_20 = arith.constant 1.000000e+00 : f32
    %64 = vector.broadcast %cst_20 : f32 to vector<2x128xf32>
    %65 = arith.addf %63, %64 : vector<2x128xf32>
    %cst_21 = arith.constant 5.000000e-01 : f32
    %66 = vector.broadcast %cst_21 : f32 to vector<2x128xf32>
    %67 = arith.mulf %66, %65 : vector<2x128xf32>
    %68 = vector.extract_strided_slice %67 {offsets = [0, 0], sizes = [2, 32], strides = [1, 1]} : vector<2x128xf32> to vector<2x32xf32>
    %69 = vector.extract_strided_slice %67 {offsets = [0, 32], sizes = [2, 32], strides = [1, 1]} : vector<2x128xf32> to vector<2x32xf32>
    %70 = vector.extract_strided_slice %67 {offsets = [0, 96], sizes = [2, 32], strides = [1, 1]} : vector<2x128xf32> to vector<2x32xf32>
    %71 = vector.extract_strided_slice %60 {offsets = [0, 64], sizes = [2, 32], strides = [1, 1]} : vector<2x128xf32> to vector<2x32xf32>
    %72 = math.tanh %71 : vector<2x32xf32>
    %73 = arith.mulf %69, %56 : vector<2x32xf32>
    %74 = arith.mulf %68, %72 : vector<2x32xf32>
    %75 = arith.addf %73, %74 : vector<2x32xf32>
    %76 = math.tanh %75 : vector<2x32xf32>
    %77 = arith.mulf %70, %76 : vector<2x32xf32>
    %cst_22 = arith.constant dense<0.000000e+00> : vector<2x128xf32>
    %78 = tpu.matmul %77, %2, %cst_22 {dimension_numbers = #tpu.dot_dimension_numbers<[1], [0], [0], [1], [0, 0, 1, 1], [], []>} : vector<2x32xf32>, vector<32x128xf32>, vector<2x128xf32> -> vector<2x128xf32>
    %79 = arith.addf %6, %78 : vector<2x128xf32>
    %cst_23 = arith.constant 5.000000e-01 : f32
    %80 = vector.broadcast %cst_23 : f32 to vector<2x128xf32>
    %81 = arith.mulf %80, %79 : vector<2x128xf32>
    %82 = math.tanh %81 : vector<2x128xf32>
    %cst_24 = arith.constant 1.000000e+00 : f32
    %83 = vector.broadcast %cst_24 : f32 to vector<2x128xf32>
    %84 = arith.addf %82, %83 : vector<2x128xf32>
    %cst_25 = arith.constant 5.000000e-01 : f32
    %85 = vector.broadcast %cst_25 : f32 to vector<2x128xf32>
    %86 = arith.mulf %85, %84 : vector<2x128xf32>
    %87 = vector.extract_strided_slice %86 {offsets = [0, 0], sizes = [2, 32], strides = [1, 1]} : vector<2x128xf32> to vector<2x32xf32>
    %88 = vector.extract_strided_slice %86 {offsets = [0, 32], sizes = [2, 32], strides = [1, 1]} : vector<2x128xf32> to vector<2x32xf32>
    %89 = vector.extract_strided_slice %86 {offsets = [0, 96], sizes = [2, 32], strides = [1, 1]} : vector<2x128xf32> to vector<2x32xf32>
    %90 = vector.extract_strided_slice %79 {offsets = [0, 64], sizes = [2, 32], strides = [1, 1]} : vector<2x128xf32> to vector<2x32xf32>
    %91 = math.tanh %90 : vector<2x32xf32>
    %92 = arith.mulf %88, %75 : vector<2x32xf32>
    %93 = arith.mulf %87, %91 : vector<2x32xf32>
    %94 = arith.addf %92, %93 : vector<2x32xf32>
    %95 = math.tanh %94 : vector<2x32xf32>
    %96 = arith.mulf %89, %95 : vector<2x32xf32>
    %cst_26 = arith.constant dense<0.000000e+00> : vector<2x128xf32>
    %97 = tpu.matmul %96, %2, %cst_26 {dimension_numbers = #tpu.dot_dimension_numbers<[1], [0], [0], [1], [0, 0, 1, 1], [], []>} : vector<2x32xf32>, vector<32x128xf32>, vector<2x128xf32> -> vector<2x128xf32>
    %98 = arith.addf %6, %97 : vector<2x128xf32>
    %cst_27 = arith.constant 5.000000e-01 : f32
    %99 = vector.broadcast %cst_27 : f32 to vector<2x128xf32>
    %100 = arith.mulf %99, %98 : vector<2x128xf32>
    %101 = math.tanh %100 : vector<2x128xf32>
    %cst_28 = arith.constant 1.000000e+00 : f32
    %102 = vector.broadcast %cst_28 : f32 to vector<2x128xf32>
    %103 = arith.addf %101, %102 : vector<2x128xf32>
    %cst_29 = arith.constant 5.000000e-01 : f32
    %104 = vector.broadcast %cst_29 : f32 to vector<2x128xf32>
    %105 = arith.mulf %104, %103 : vector<2x128xf32>
    %106 = vector.extract_strided_slice %105 {offsets = [0, 0], sizes = [2, 32], strides = [1, 1]} : vector<2x128xf32> to vector<2x32xf32>
    %107 = vector.extract_strided_slice %105 {offsets = [0, 32], sizes = [2, 32], strides = [1, 1]} : vector<2x128xf32> to vector<2x32xf32>
    %108 = vector.extract_strided_slice %105 {offsets = [0, 96], sizes = [2, 32], strides = [1, 1]} : vector<2x128xf32> to vector<2x32xf32>
    %109 = vector.extract_strided_slice %98 {offsets = [0, 64], sizes = [2, 32], strides = [1, 1]} : vector<2x128xf32> to vector<2x32xf32>
    %110 = math.tanh %109 : vector<2x32xf32>
    %111 = arith.mulf %107, %94 : vector<2x32xf32>
    %112 = arith.mulf %106, %110 : vector<2x32xf32>
    %113 = arith.addf %111, %112 : vector<2x32xf32>
    %114 = math.tanh %113 : vector<2x32xf32>
    %115 = arith.mulf %108, %114 : vector<2x32xf32>
    %cst_30 = arith.constant dense<0.000000e+00> : vector<2x128xf32>
    %116 = tpu.matmul %115, %2, %cst_30 {dimension_numbers = #tpu.dot_dimension_numbers<[1], [0], [0], [1], [0, 0, 1, 1], [], []>} : vector<2x32xf32>, vector<32x128xf32>, vector<2x128xf32> -> vector<2x128xf32>
    %117 = arith.addf %6, %116 : vector<2x128xf32>
    %cst_31 = arith.constant 5.000000e-01 : f32
    %118 = vector.broadcast %cst_31 : f32 to vector<2x128xf32>
    %119 = arith.mulf %118, %117 : vector<2x128xf32>
    %120 = math.tanh %119 : vector<2x128xf32>
    %cst_32 = arith.constant 1.000000e+00 : f32
    %121 = vector.broadcast %cst_32 : f32 to vector<2x128xf32>
    %122 = arith.addf %120, %121 : vector<2x128xf32>
    %cst_33 = arith.constant 5.000000e-01 : f32
    %123 = vector.broadcast %cst_33 : f32 to vector<2x128xf32>
    %124 = arith.mulf %123, %122 : vector<2x128xf32>
    %125 = vector.extract_strided_slice %124 {offsets = [0, 0], sizes = [2, 32], strides = [1, 1]} : vector<2x128xf32> to vector<2x32xf32>
    %126 = vector.extract_strided_slice %124 {offsets = [0, 32], sizes = [2, 32], strides = [1, 1]} : vector<2x128xf32> to vector<2x32xf32>
    %127 = vector.extract_strided_slice %124 {offsets = [0, 96], sizes = [2, 32], strides = [1, 1]} : vector<2x128xf32> to vector<2x32xf32>
    %128 = vector.extract_strided_slice %117 {offsets = [0, 64], sizes = [2, 32], strides = [1, 1]} : vector<2x128xf32> to vector<2x32xf32>
    %129 = math.tanh %128 : vector<2x32xf32>
    %130 = arith.mulf %126, %113 : vector<2x32xf32>
    %131 = arith.mulf %125, %129 : vector<2x32xf32>
    %132 = arith.addf %130, %131 : vector<2x32xf32>
    %133 = math.tanh %132 : vector<2x32xf32>
    %134 = arith.mulf %127, %133 : vector<2x32xf32>
    %cst_34 = arith.constant dense<0.000000e+00> : vector<2x128xf32>
    %135 = tpu.matmul %134, %2, %cst_34 {dimension_numbers = #tpu.dot_dimension_numbers<[1], [0], [0], [1], [0, 0, 1, 1], [], []>} : vector<2x32xf32>, vector<32x128xf32>, vector<2x128xf32> -> vector<2x128xf32>
    %136 = arith.addf %6, %135 : vector<2x128xf32>
    %cst_35 = arith.constant 5.000000e-01 : f32
    %137 = vector.broadcast %cst_35 : f32 to vector<2x128xf32>
    %138 = arith.mulf %137, %136 : vector<2x128xf32>
    %139 = math.tanh %138 : vector<2x128xf32>
    %cst_36 = arith.constant 1.000000e+00 : f32
    %140 = vector.broadcast %cst_36 : f32 to vector<2x128xf32>
    %141 = arith.addf %139, %140 : vector<2x128xf32>
    %cst_37 = arith.constant 5.000000e-01 : f32
    %142 = vector.broadcast %cst_37 : f32 to vector<2x128xf32>
    %143 = arith.mulf %142, %141 : vector<2x128xf32>
    %144 = vector.extract_strided_slice %143 {offsets = [0, 0], sizes = [2, 32], strides = [1, 1]} : vector<2x128xf32> to vector<2x32xf32>
    %145 = vector.extract_strided_slice %143 {offsets = [0, 32], sizes = [2, 32], strides = [1, 1]} : vector<2x128xf32> to vector<2x32xf32>
    %146 = vector.extract_strided_slice %143 {offsets = [0, 96], sizes = [2, 32], strides = [1, 1]} : vector<2x128xf32> to vector<2x32xf32>
    %147 = vector.extract_strided_slice %136 {offsets = [0, 64], sizes = [2, 32], strides = [1, 1]} : vector<2x128xf32> to vector<2x32xf32>
    %148 = math.tanh %147 : vector<2x32xf32>
    %149 = arith.mulf %145, %132 : vector<2x32xf32>
    %150 = arith.mulf %144, %148 : vector<2x32xf32>
    %151 = arith.addf %149, %150 : vector<2x32xf32>
    %152 = math.tanh %151 : vector<2x32xf32>
    %153 = arith.mulf %146, %152 : vector<2x32xf32>
    %154 = tpu.concatenate %20, %39, %58, %77 in 1 : vector<2x32xf32>, vector<2x32xf32>, vector<2x32xf32>, vector<2x32xf32> -> vector<2x128xf32>
    %c0_38 = arith.constant 0 : index
    %c0_39 = arith.constant 0 : index
    %155 = vector.load %arg4[%c0_38, %c0_39] : memref<2x256xf32, #tpu.memory_space<vmem>>, vector<2x128xf32>
    tpu.vector_store %arg4[%c0_38, %c0_39], %154 {strides = array<i32>} : memref<2x256xf32, #tpu.memory_space<vmem>>, vector<2x128xf32>,
    %156 = tpu.concatenate %96, %115, %134, %153 in 1 : vector<2x32xf32>, vector<2x32xf32>, vector<2x32xf32>, vector<2x32xf32> -> vector<2x128xf32>
    %c0_40 = arith.constant 0 : index
    %c128 = arith.constant 128 : index
    %157 = vector.load %arg4[%c0_40, %c128] : memref<2x256xf32, #tpu.memory_space<vmem>>, vector<2x128xf32>
    tpu.vector_store %arg4[%c0_40, %c128], %156 {strides = array<i32>} : memref<2x256xf32, #tpu.memory_space<vmem>>, vector<2x128xf32>,
    return
  }
}

</mosaic_0001>

<bundles_post_ra>
// kernel: decoder_forward.1
= control target key start
LH: loop header
LB: loop body
LE: loop exit
PB: predicated region body
PF: predicated region fallthrough
CT: control target
= control target key end

     0   :  { %9 = vsyncpa [#allocation3], 0  ;;  %s1359_s0 = inlined_call_operand.vmem [shape: f32[2,32], index: 0, kind: input, shape index: {}]   ;;  %s1360_s1 = inlined_call_operand.hbm [shape: f32[32,128], index: 1, kind: input, shape index: {}]   ;;  %s1361_s2 = inlined_call_operand.hbm [shape: f32[32,128], index: 2, kind: input, shape index: {}]   ;;  %s1362_s3 = inlined_call_operand.vmem [shape: f32[1,128], index: 3, kind: input, shape index: {}]   ;;  %s1363_s4 = inlined_call_operand.vmem [shape: f32[2,256], index: 4, kind: output, shape index: {}]  }
   0x1   :  { %10 = vsyncpa [#allocation5], 0  ;;  %s1162_s15 = smov [#allocation2]   ;;  %s1114_s19 = scalar_lea.hbm %s1360_s1, 512 }
   0x2   :  { %s18_s16 = sshll.u32 %s1162_s15, 4  ;;  %p1115_p0 = scmp.ne.s32.totalorder %s1360_s1, %s1114_s19  ;;  %s19_s16 = int_to_ptr.vmem [resolvable:$true] %s18_s16 }
   0x3   :  { %p1118_p1 = scmp.lt.u32.totalorder %s1114_s19, %s1360_s1 }
   0x5   :  { %p1120_p2 = pnand %p1118_p1, %p1115_p0 }
   0x7   :  { %1123 = shalt.err (!%p1120_p2)
}
   0x8   :  { %s1124_s24 = scalar_lea.vmem %s19_s16, 512  ;;  %p1129_p4 = scmp.lt.s32.totalorder %s19_s16, %s19_s16 }
   0x9   :  { %p1125_p3 = scmp.ne.s32.totalorder %s19_s16, %s1124_s24  ;;  %p1130_p5 = scmp.lt.s32.totalorder %s1124_s24, %s1124_s24 }
   0xb   :  { %p1131_p6 = por %p1130_p5, %p1129_p4 }
   0xd   :  { %p1132_p7 = pnand %p1131_p6, %p1125_p3 }
   0xf   :  { %1135 = shalt.err (!%p1132_p7)
}
  0x10   :  { %s1163_s25 = smov 128   ;;  %s1164_s26 = smov 8  }
  0x11   :  { %24 = dma.hbm_to_vmem [thread:$0]  %s1360_s1, 512, %s19_s16, [#allocation3], %s1163_s25, %s1163_s25, %s1164_s26  }
  0x12   :  { %s1165_s29 = smov [#allocation4]   ;;  %s1136_s7 = scalar_lea.hbm %s1361_s2, 512 }
  0x13   :  { %s30_s30 = sshll.u32 %s1165_s29, 4  ;;  %p1137_p8 = scmp.ne.s32.totalorder %s1361_s2, %s1136_s7  ;;  %s31_s30 = int_to_ptr.vmem [resolvable:$true] %s30_s30 }
  0x14   :  { %p1140_p9 = scmp.lt.u32.totalorder %s1136_s7, %s1361_s2 }
  0x16   :  { %p1142_p10 = pnand %p1140_p9, %p1137_p8 }
  0x18   :  { %1145 = shalt.err (!%p1142_p10)
}
  0x19   :  { %s1146_s12 = scalar_lea.vmem %s31_s30, 512  ;;  %p1151_p12 = scmp.lt.s32.totalorder %s31_s30, %s31_s30 }
  0x1a   :  { %p1147_p11 = scmp.ne.s32.totalorder %s31_s30, %s1146_s12  ;;  %p1152_p13 = scmp.lt.s32.totalorder %s1146_s12, %s1146_s12 }
  0x1c   :  { %p1153_p0 = por %p1152_p13, %p1151_p12 }
  0x1e   :  { %p1154_p1 = pnand %p1153_p0, %p1147_p11 }
  0x20   :  { %1157 = shalt.err (!%p1154_p1)
}
  0x21   :  { %36 = dma.hbm_to_vmem [thread:$0]  %s1361_s2, 512, %s31_s30, [#allocation5], %s1163_s25, %s1163_s25, %s1164_s26  }
  0x22   :  { %1158 = dma.done.wait [#allocation3], 512  }
  0x23   :  { %1159 = vsyncadd [#allocation3], 4294966784 }
  0x24   :  { %1160 = dma.done.wait [#allocation5], 512  }
  0x25   :  { %1161 = vsyncadd [#allocation5], 4294966784  ;;  %v1166_v0 = vmov 0.0|0.0   ;;  %vm1167_vm0 = vmmov 0   ;;  %v1168_v1 = vmov 0.0   ;;  %v51_v2 = vld [vmem:[#allocation2] sm:$0xff] }
  0x26   :  { %1008 = vmatprep.subr.bf16.mxu0 %v1166_v0  ;;  %928 = vmatprep.mubr.msk.f32.mxu0 %vm1167_vm0, %v1168_v1  ;;  %v52_v3 = vld [vmem:[#allocation2 + $0x8] sm:$0xff]  ;;  %v53_v4 = vld [vmem:[#allocation2 + $0x10] sm:$0xff]  ;;  %v54_v6 = vld [vmem:[#allocation2 + $0x18] sm:$0xff]  ;;  %vm61_vm1 = vcmask 261120   ;;  %s1171_s17 = smov 32   ;;  %vm849_vm2 = vcmask 523264  }
  0x27   :  { %1014 = vmatprep.subr.bf16.mxu1 %v1166_v0  ;;  %939 = vmatprep.mubr.msk.f32.mxu1 %vm1167_vm0, %v1168_v1  ;;  %v1009_v5 = vpack.c.bf16 %v52_v3, %v51_v2  ;;  %v1012_v7 = vpack.c.bf16 %v54_v6, %v53_v4  ;;  %v45_v8 = vld [vmem:[%s1359_s0] sm:$0x3]  ;;  %s1169_s0 = smov 64   ;;  %v48_v21 = vld [vmem:[#allocation4 + $0x8] sm:$0xff]  ;;  %v49_v22 = vld [vmem:[#allocation4 + $0x10] sm:$0xff]  ;;  %vm851_vm3 = vcmask 785408  }
  0x28   :  { %v871_v9 = vld [vmem:[%s1362_s3] ss:$0 sm:$0xff]  ;;  %v50_v24 = vld [vmem:[#allocation4 + $0x18] sm:$0xff]  ;;  %s1170_s3 = smov 96  }
  0x29   :  { %1010 = vmatpush3.bf16.msra.mxu0 %v1009_v5  ;;  %v47_v20 = vld [vmem:[#allocation4] sm:$0xff]  ;;  %v1246_v25 = vpack.c.bf16 %v50_v24, %v49_v22 }
  0x2a   :  { %1011 = vmatprep.subr.bf16.mxu0 %v1166_v0  ;;  %v1243_v23 = vpack.c.bf16 %v48_v21, %v47_v20 }
  0x2c   :  { %1016 = vmatpush3.bf16.msra.mxu1 %v1243_v23 }
  0x2d   :  { %1013 = vmatpush3.bf16.msra.mxu0 %v1012_v7  ;;  %1017 = vmatprep.subr.bf16.mxu1 %v1166_v0 }
  0x2e   :  { %1020 = vmatprep.subr.bf16.mxu0 %v1166_v0 }
  0x30   :  { %929 = vmatmul.mubr.msk.f32.vlgmr.msra.gmra.mrb[0].mxu0 %vm61_vm1, %v45_v8  ;;  %1019 = vmatpush3.bf16.msra.mxu1 %v1246_v25 }
  0x31   :  { %950 = vmatprep.mubr.msk.f32.mxu0 %vm1167_vm0, %v1168_v1  ;;  %1022 = vmatpush3.bf16.msra.mxu0 %v1243_v23 }
  0x32   :  { %1023 = vmatprep.subr.bf16.mxu0 %v1166_v0  ;;  %1026 = vmatprep.subr.bf16.mxu1 %v1166_v0 }
  0x35   :  { %1025 = vmatpush3.bf16.msra.mxu0 %v1246_v25 }
  0x36   :  { %1032 = vmatprep.subr.bf16.mxu0 %v1166_v0 }
 0x103   :  { %v131_v10 = vpop.f32.mrb[0].mxu0 }
 0x104   :  { %v1238_v11 = vadd.f32 %v871_v9, %v131_v10  ;;  %v930_v12 = vpop.f32.mrb[1].mxu0 }
 0x106   :  { %1066 = vtanh.f32 %v1238_v11  ;;  %v135_v14 = vmul.f32 0.5, %v1238_v11 }
 0x108   :  { %1068 = vtanh.f32 %v135_v14 }
 0x110   :  { %v1067_v13 = vpop.eup %1066 }
 0x111   :  { %141 = vrot.lane.b32.xlu0 %v1067_v13, %s1169_s0 }
 0x112   :  { %v1069_v15 = vpop.eup %1068 }
 0x113   :  { %v137_v16 = vadd.f32 1.0, %v1069_v15 }
 0x115   :  { %v138_v17 = vmul.f32 0.5, %v137_v16 }
 0x183   :  { %v142_v18 = vpop.permute.xlu0 %141 }
 0x184   :  { %v144_v19 = vmul.f32 %v142_v18, %v138_v17 }
 0x186   :  { %1070 = vtanh.f32 %v144_v19 }
 0x190   :  { %v1071_v26 = vpop.eup %1070 }
 0x191   :  { %147 = vrot.lane.b32.xlu0 %v1071_v26, %s1170_s3 }
 0x195   :  { %233 = vrot.lane.b32.xlu0 %v144_v19, %s1171_s17 }
 0x203   :  { %v148_v27 = vpop.permute.xlu0 %147 }
 0x204   :  { %v150_v28 = vmul.f32 %v148_v27, %v138_v17 }
 0x206   :  { %152 = vrot.lane.b32.xlu1 %v150_v28, %s1171_s17 }
 0x207   :  { %v234_v40 = vpop.permute.xlu0 %233 }
 0x278   :  { %v1258_v29 = vpop.permute.xlu1 %152 }
 0x279   :  { %940 = vmatmul.mubr.msk.f32.vlgmr.msra.gmra.mrb[0].mxu1 %vm61_vm1, %v1258_v29 }
 0x27a   :  { %1028 = vmatpush3.bf16.msra.mxu1 %v1243_v23  ;;  %961 = vmatprep.mubr.msk.f32.mxu1 %vm1167_vm0, %v1168_v1 }
 0x27b   :  { %1029 = vmatprep.subr.bf16.mxu1 %v1166_v0 }
 0x27e   :  { %1031 = vmatpush3.bf16.msra.mxu1 %v1246_v25 }
 0x27f   :  { %1038 = vmatprep.subr.bf16.mxu1 %v1166_v0 }
 0x34c   :  { %v222_v30 = vpop.f32.mrb[0].mxu1 }
 0x34d   :  { %v226_v31 = vadd.f32 %v222_v30, %v1238_v11  ;;  %v941_v32 = vpop.f32.mrb[1].mxu1 }
 0x34f   :  { %1072 = vtanh.f32 %v226_v31  ;;  %v227_v34 = vmul.f32 0.5, %v226_v31 }
 0x351   :  { %1074 = vtanh.f32 %v227_v34 }
 0x359   :  { %v1073_v33 = vpop.eup %1072 }
 0x35a   :  { %238 = vrot.lane.b32.xlu1 %v1073_v33, %s1169_s0 }
 0x35b   :  { %v1075_v35 = vpop.eup %1074 }
 0x35c   :  { %v229_v36 = vadd.f32 1.0, %v1075_v35 }
 0x35e   :  { %v230_v37 = vmul.f32 0.5, %v229_v36 }
 0x360   :  { %v236_v41 = vmul.f32 %v234_v40, %v230_v37 }
 0x3cc   :  { %v239_v38 = vpop.permute.xlu1 %238 }
 0x3cd   :  { %v241_v39 = vmul.f32 %v239_v38, %v230_v37 }
 0x3cf   :  { %243 = vrot.lane.b32.xlu1 %v241_v39, %s1171_s17 }
 0x441   :  { %v244_v42 = vpop.permute.xlu1 %243 }
 0x442   :  { %v246_v43 = vadd.f32 %v244_v42, %v236_v41 }
 0x444   :  { %1076 = vtanh.f32 %v246_v43 }
 0x44e   :  { %v1077_v44 = vpop.eup %1076 }
 0x44f   :  { %249 = vrot.lane.b32.xlu0 %v1077_v44, %s1169_s0 }
 0x4c1   :  { %v250_v45 = vpop.permute.xlu0 %249 }
 0x4c2   :  { %v1272_v46 = vmul.f32 %v250_v45, %v230_v37 }
 0x4c4   :  { %254 = vrot.lane.b32.xlu1 %v1272_v46, %s1171_s17 }
 0x536   :  { %v255_v47 = vpop.permute.xlu1 %254 }
 0x537   :  { %951 = vmatmul.mubr.msk.f32.vlgmr.msra.gmra.mrb[2].mxu0 %vm61_vm1, %v255_v47 }
 0x538   :  { %1034 = vmatpush3.bf16.msra.mxu0 %v1243_v23  ;;  %972 = vmatprep.mubr.msk.f32.mxu0 %vm1167_vm0, %v1168_v1 }
 0x539   :  { %1035 = vmatprep.subr.bf16.mxu0 %v1166_v0 }
 0x53c   :  { %1037 = vmatpush3.bf16.msra.mxu0 %v1246_v25 }
 0x53d   :  { %1044 = vmatprep.subr.bf16.mxu0 %v1166_v0 }
 0x60a   :  { %v324_v48 = vpop.f32.mrb[2].mxu0 }
 0x60b   :  { %v328_v49 = vadd.f32 %v324_v48, %v1238_v11  ;;  %v952_v50 = vpop.f32.mrb[3].mxu0 }
 0x60d   :  { %1078 = vtanh.f32 %v328_v49  ;;  %v329_v52 = vmul.f32 0.5, %v328_v49 }
 0x60f   :  { %1080 = vtanh.f32 %v329_v52 }
 0x617   :  { %v1079_v51 = vpop.eup %1078 }
 0x618   :  { %336 = vrot.lane.b32.xlu0 %v1079_v51, %s1169_s0 }
 0x619   :  { %v1081_v53 = vpop.eup %1080 }
 0x61a   :  { %v331_v54 = vadd.f32 1.0, %v1081_v53 }
 0x61c   :  { %v332_v55 = vmul.f32 0.5, %v331_v54 }
 0x61e   :  { %v334_v58 = vmul.f32 %v332_v55, %v246_v43 }
 0x68a   :  { %v337_v56 = vpop.permute.xlu0 %336 }
 0x68b   :  { %v339_v57 = vmul.f32 %v337_v56, %v332_v55 }
 0x68d   :  { %341 = vrot.lane.b32.xlu1 %v339_v57, %s1171_s17 }
 0x6ff   :  { %v342_v59 = vpop.permute.xlu1 %341 }
 0x700   :  { %v344_v60 = vadd.f32 %v342_v59, %v334_v58 }
 0x702   :  { %1082 = vtanh.f32 %v344_v60 }
 0x70c   :  { %v1083_v61 = vpop.eup %1082 }
 0x70d   :  { %347 = vrot.lane.b32.xlu0 %v1083_v61, %s1169_s0 }
 0x77f   :  { %v348_v62 = vpop.permute.xlu0 %347 }
 0x780   :  { %v1287_v63 = vmul.f32 %v348_v62, %v332_v55 }
 0x782   :  { %352 = vrot.lane.b32.xlu1 %v1287_v63, %s1171_s17 }
 0x7f4   :  { %v353_v2 = vpop.permute.xlu1 %352 }
 0x7f5   :  { %962 = vmatmul.mubr.msk.f32.vlgmr.msra.gmra.mrb[2].mxu1 %vm61_vm1, %v353_v2 }
 0x7f6   :  { %1040 = vmatpush3.bf16.msra.mxu1 %v1243_v23  ;;  %983 = vmatprep.mubr.msk.f32.mxu1 %vm1167_vm0, %v1168_v1 }
 0x7f7   :  { %1041 = vmatprep.subr.bf16.mxu1 %v1166_v0 }
 0x7fa   :  { %1043 = vmatpush3.bf16.msra.mxu1 %v1246_v25 }
 0x7fb   :  { %1050 = vmatprep.subr.bf16.mxu1 %v1166_v0 }
 0x8c8   :  { %v422_v3 = vpop.f32.mrb[2].mxu1 }
 0x8c9   :  { %v426_v4 = vadd.f32 %v422_v3, %v1238_v11  ;;  %v963_v5 = vpop.f32.mrb[3].mxu1 }
 0x8cb   :  { %1084 = vtanh.f32 %v426_v4  ;;  %v427_v7 = vmul.f32 0.5, %v426_v4 }
 0x8cd   :  { %1086 = vtanh.f32 %v427_v7 }
 0x8d5   :  { %v1085_v6 = vpop.eup %1084 }
 0x8d6   :  { %434 = vrot.lane.b32.xlu0 %v1085_v6, %s1169_s0 }
 0x8d7   :  { %v1087_v8 = vpop.eup %1086 }
 0x8d8   :  { %v429_v9 = vadd.f32 1.0, %v1087_v8 }
 0x8da   :  { %v430_v10 = vmul.f32 0.5, %v429_v9 }
 0x8dc   :  { %v432_v14 = vmul.f32 %v430_v10, %v344_v60 }
 0x948   :  { %v435_v12 = vpop.permute.xlu0 %434 }
 0x949   :  { %v437_v13 = vmul.f32 %v435_v12, %v430_v10 }
 0x94b   :  { %439 = vrot.lane.b32.xlu1 %v437_v13, %s1171_s17 }
 0x9bd   :  { %v440_v15 = vpop.permute.xlu1 %439 }
 0x9be   :  { %v442_v16 = vadd.f32 %v440_v15, %v432_v14 }
 0x9c0   :  { %1088 = vtanh.f32 %v442_v16 }
 0x9ca   :  { %v1089_v17 = vpop.eup %1088 }
 0x9cb   :  { %445 = vrot.lane.b32.xlu0 %v1089_v17, %s1169_s0 }
 0xa3d   :  { %v446_v18 = vpop.permute.xlu0 %445 }
 0xa3e   :  { %v1302_v19 = vmul.f32 %v446_v18, %v430_v10 }
 0xa40   :  { %450 = vrot.lane.b32.xlu1 %v1302_v19, %s1171_s17 }
 0xab2   :  { %v451_v20 = vpop.permute.xlu1 %450 }
 0xab3   :  { %973 = vmatmul.mubr.msk.f32.vlgmr.msra.gmra.mrb[4].mxu0 %vm61_vm1, %v451_v20 }
 0xab4   :  { %1046 = vmatpush3.bf16.msra.mxu0 %v1243_v23  ;;  %994 = vmatprep.mubr.msk.f32.mxu0 %vm1167_vm0, %v1168_v1 }
 0xab5   :  { %1047 = vmatprep.subr.bf16.mxu0 %v1166_v0 }
 0xab8   :  { %1049 = vmatpush3.bf16.msra.mxu0 %v1246_v25 }
 0xb86   :  { %v520_v21 = vpop.f32.mrb[4].mxu0 }
 0xb87   :  { %v524_v22 = vadd.f32 %v520_v21, %v1238_v11  ;;  %v974_v24 = vpop.f32.mrb[5].mxu0 }
 0xb89   :  { %1090 = vtanh.f32 %v524_v22  ;;  %v525_v27 = vmul.f32 0.5, %v524_v22 }
 0xb8b   :  { %1092 = vtanh.f32 %v525_v27 }
 0xb93   :  { %v1091_v26 = vpop.eup %1090 }
 0xb94   :  { %532 = vrot.lane.b32.xlu0 %v1091_v26, %s1169_s0 }
 0xb95   :  { %v1093_v28 = vpop.eup %1092 }
 0xb96   :  { %v527_v30 = vadd.f32 1.0, %v1093_v28 }
 0xb98   :  { %v528_v31 = vmul.f32 0.5, %v527_v30 }
 0xb9a   :  { %v530_v34 = vmul.f32 %v528_v31, %v442_v16 }
 0xc06   :  { %v533_v32 = vpop.permute.xlu0 %532 }
 0xc07   :  { %v535_v33 = vmul.f32 %v533_v32, %v528_v31 }
 0xc09   :  { %537 = vrot.lane.b32.xlu1 %v535_v33, %s1171_s17 }
 0xc7b   :  { %v538_v35 = vpop.permute.xlu1 %537 }
 0xc7c   :  { %v540_v36 = vadd.f32 %v538_v35, %v530_v34 }
 0xc7e   :  { %1094 = vtanh.f32 %v540_v36 }
 0xc88   :  { %v1095_v37 = vpop.eup %1094 }
 0xc89   :  { %543 = vrot.lane.b32.xlu0 %v1095_v37, %s1169_s0 }
 0xcfb   :  { %v544_v38 = vpop.permute.xlu0 %543 }
 0xcfc   :  { %v546_v39 = vmul.f32 %v544_v38, %v528_v31 }
 0xcfe   :  { %548 = vrot.lane.b32.xlu1 %v546_v39, %s1171_s17 }
 0xd70   :  { %v1317_v40 = vpop.permute.xlu1 %548 }
 0xd71   :  { %984 = vmatmul.mubr.msk.f32.vlgmr.msra.gmra.mrb[4].mxu1 %vm61_vm1, %v1317_v40 }
 0xd72   :  { %1052 = vmatpush3.bf16.msra.mxu1 %v1243_v23  ;;  %1005 = vmatprep.mubr.msk.f32.mxu1 %vm1167_vm0, %v1168_v1 }
 0xd73   :  { %1053 = vmatprep.subr.bf16.mxu1 %v1166_v0 }
 0xd76   :  { %1055 = vmatpush3.bf16.msra.mxu1 %v1246_v25 }
 0xe44   :  { %v618_v41 = vpop.f32.mrb[4].mxu1 }
 0xe45   :  { %v622_v42 = vadd.f32 %v618_v41, %v1238_v11  ;;  %v985_v43 = vpop.f32.mrb[5].mxu1 }
 0xe47   :  { %1096 = vtanh.f32 %v622_v42  ;;  %v623_v45 = vmul.f32 0.5, %v622_v42 }
 0xe49   :  { %1098 = vtanh.f32 %v623_v45 }
 0xe51   :  { %v1097_v44 = vpop.eup %1096 }
 0xe52   :  { %630 = vrot.lane.b32.xlu0 %v1097_v44, %s1169_s0 }
 0xe53   :  { %v1099_v47 = vpop.eup %1098 }
 0xe54   :  { %v625_v48 = vadd.f32 1.0, %v1099_v47 }
 0xe56   :  { %v626_v23 = vmul.f32 0.5, %v625_v48 }
 0xe58   :  { %v628_v0 = vmul.f32 %v626_v23, %v540_v36 }
 0xec4   :  { %v631_v49 = vpop.permute.xlu0 %630 }
 0xec5   :  { %v633_v50 = vmul.f32 %v631_v49, %v626_v23 }
 0xec7   :  { %635 = vrot.lane.b32.xlu1 %v633_v50, %s1171_s17 }
 0xf39   :  { %v636_v1 = vpop.permute.xlu1 %635 }
 0xf3a   :  { %v638_v25 = vadd.f32 %v636_v1, %v628_v0 }
 0xf3c   :  { %1100 = vtanh.f32 %v638_v25 }
 0xf46   :  { %v1101_v51 = vpop.eup %1100 }
 0xf47   :  { %641 = vrot.lane.b32.xlu0 %v1101_v51, %s1169_s0 }
 0xfb9   :  { %v642_v52 = vpop.permute.xlu0 %641 }
 0xfba   :  { %v644_v53 = vmul.f32 %v642_v52, %v626_v23 }
 0xfbc   :  { %646 = vrot.lane.b32.xlu1 %v644_v53, %s1171_s17 }
0x102e   :  { %v647_v54 = vpop.permute.xlu1 %646 }
0x102f   :  { %995 = vmatmul.mubr.msk.f32.vlgmr.msra.gmra.mrb[6].mxu0 %vm61_vm1, %v647_v54 }
0x1102   :  { %v716_v55 = vpop.f32.mrb[6].mxu0 }
0x1103   :  { %v720_v56 = vadd.f32 %v716_v55, %v1238_v11  ;;  %v996_v57 = vpop.f32.mrb[7].mxu0 }
0x1105   :  { %1102 = vtanh.f32 %v720_v56  ;;  %v721_v59 = vmul.f32 0.5, %v720_v56 }
0x1107   :  { %1104 = vtanh.f32 %v721_v59 }
0x110f   :  { %v1103_v58 = vpop.eup %1102 }
0x1110   :  { %728 = vrot.lane.b32.xlu0 %v1103_v58, %s1169_s0 }
0x1111   :  { %v1105_v60 = vpop.eup %1104 }
0x1112   :  { %v723_v61 = vadd.f32 1.0, %v1105_v60 }
0x1114   :  { %v724_v62 = vmul.f32 0.5, %v723_v61 }
0x1116   :  { %v726_v4 = vmul.f32 %v724_v62, %v638_v25 }
0x1182   :  { %v729_v2 = vpop.permute.xlu0 %728 }
0x1183   :  { %v731_v3 = vmul.f32 %v729_v2, %v724_v62 }
0x1185   :  { %733 = vrot.lane.b32.xlu1 %v731_v3, %s1171_s17 }
0x11f7   :  { %v734_v5 = vpop.permute.xlu1 %733 }
0x11f8   :  { %v736_v6 = vadd.f32 %v734_v5, %v726_v4 }
0x11fa   :  { %1106 = vtanh.f32 %v736_v6 }
0x1204   :  { %v1107_v7 = vpop.eup %1106 }
0x1205   :  { %739 = vrot.lane.b32.xlu0 %v1107_v7, %s1169_s0 }
0x1277   :  { %v740_v8 = vpop.permute.xlu0 %739 }
0x1278   :  { %v742_v9 = vmul.f32 %v740_v8, %v724_v62 }
0x127a   :  { %744 = vrot.lane.b32.xlu1 %v742_v9, %s1171_s17 }
0x12ec   :  { %v745_v10 = vpop.permute.xlu1 %744 }
0x12ed   :  { %1006 = vmatmul.mubr.msk.f32.vlgmr.msra.gmra.mrb[6].mxu1 %vm61_vm1, %v745_v10 }
0x13c0   :  { %v814_v12 = vpop.f32.mrb[6].mxu1 }
0x13c1   :  { %v818_v13 = vadd.f32 %v814_v12, %v1238_v11  ;;  %v1007_v14 = vpop.f32.mrb[7].mxu1 }
0x13c3   :  { %1108 = vtanh.f32 %v818_v13  ;;  %v819_v16 = vmul.f32 0.5, %v818_v13 }
0x13c5   :  { %1110 = vtanh.f32 %v819_v16 }
0x13cd   :  { %v1109_v15 = vpop.eup %1108 }
0x13ce   :  { %826 = vrot.lane.b32.xlu0 %v1109_v15, %s1169_s0 }
0x13cf   :  { %v1111_v17 = vpop.eup %1110 }
0x13d0   :  { %v821_v18 = vadd.f32 1.0, %v1111_v17 }
0x13d2   :  { %855 = vrot.lane.b32.xlu0 %v644_v53, %s1169_s0  ;;  %v822_v20 = vmul.f32 0.5, %v821_v18 }
0x13d4   :  { %v824_v11 = vmul.f32 %v822_v20, %v736_v6 }
0x1440   :  { %v827_v21 = vpop.permute.xlu0 %826 }
0x1441   :  { %v829_v22 = vmul.f32 %v827_v21, %v822_v20 }
0x1443   :  { %831 = vrot.lane.b32.xlu1 %v829_v22, %s1171_s17 }
0x1447   :  { %842 = vrot.lane.b32.xlu1 %v1272_v46, %s1169_s0 }
0x144b   :  { %845 = vrot.lane.b32.xlu1 %v1287_v63, %s1170_s3  ;;  %v856_v63 = vpop.permute.xlu0 %855 }
0x144c   :  { %v861_v34 = vsel %vm61_vm1, %v1317_v40, %v856_v63 }
0x14b5   :  { %v832_v24 = vpop.permute.xlu1 %831 }
0x14b6   :  { %v834_v26 = vadd.f32 %v832_v24, %v824_v11 }
0x14b8   :  { %1112 = vtanh.f32 %v834_v26 }
0x14b9   :  { %v843_v27 = vpop.permute.xlu1 %842 }
0x14ba   :  { %v848_v28 = vsel %vm61_vm1, %v1258_v29, %v843_v27 }
0x14bd   :  { %v846_v30 = vpop.permute.xlu1 %845 }
0x14be   :  { %v850_v31 = vsel %vm849_vm2, %v848_v28, %v846_v30 }
0x14bf   :  { %v852_v32 = vsel %vm851_vm3, %v850_v31, %v1302_v19 }
0x14c0   :  { %853 = vst [vmem:[%s1363_s4] sm:$0x3] %v852_v32 }
0x14c2   :  { %v1113_v46 = vpop.eup %1112 }
0x14c3   :  { %837 = vrot.lane.b32.xlu0 %v1113_v46, %s1169_s0 }
0x14c7   :  { %858 = vrot.lane.b32.xlu0 %v742_v9, %s1170_s3 }
0x1535   :  { %v838_v33 = vpop.permute.xlu0 %837 }
0x1536   :  { %v840_v35 = vmul.f32 %v838_v33, %v822_v20 }
0x1539   :  { %v859_v29 = vpop.permute.xlu0 %858 }
0x153a   :  { %v862_v36 = vsel %vm849_vm2, %v861_v34, %v859_v29 }
0x153b   :  { %v863_v37 = vsel %vm851_vm3, %v862_v36, %v840_v35 }
0x153c   :  { %864 = vst [vmem:[%s1363_s4 + $0x2] sm:$0x3] %v863_v37 }
0x153d   :  { %869 = vsyncpa [#allocation3], 1 }
0x153e   :  { %870 = vsyncpa [#allocation5], 1 }

</bundles_post_ra>
